<compile_context>
chip_gen: v7x
topology: tpu7x:2x2x1
jax: 0.10.0
libtpu: 0.0.40
codegen_flags: <defaults>
</compile_context>

<pallas_src>
import functools
import math

import jax
import jax.numpy as jnp
from jax import lax
from jax.experimental import pallas as pl
from jax.experimental.pallas import tpu as pltpu


def _merger_kernel(*refs, eps, n_fields, use_seg, d, tile_rows):
    field_refs = refs[:n_fields]
    pos = n_fields
    if use_seg:
        seg_ref = refs[pos]
        pos += 1
    gamma_ref = refs[pos]
    beta_ref = refs[pos + 1]
    out_ref = refs[pos + 2]

    # --- MergeMaxLayer: streaming element-wise max across fields ---
    m = field_refs[0][...].astype(jnp.float32)
    for fr in field_refs[1:]:
        m = jnp.maximum(m, fr[...].astype(jnp.float32))

    # --- postprocess['activator'] = ReLU ---
    m = jnp.maximum(m, 0.0)

    # --- postprocess['dropout'] : identity at inference ---
    # TODO(synk): training-mode dropout (pltpu.prng_*) not wired; eval == identity.

    # --- postprocess['layernorm'] over each length-`d` feature segment ---
    # Single-pass stats (sum, sum of squares); var clamped at 0. Adequate for
    # the post-ReLU ranges here; switch to two-pass if |mean| >> std.
    if use_seg:
        # k feature rows are packed per 128-wide lane row. Segmented sum +
        # broadcast within each length-d lane group via a block-diagonal ones
        # matrix on the otherwise-idle MXU. `seg` is a pipeline input with a
        # constant index_map -> DMA'd once, resident in VMEM, never rebuilt.
        seg = seg_ref[...]
        if tile_rows >= 8:
            # One fused MXU sequence instead of two (halves push/drain cost).
            cat = jnp.concatenate([m, m * m], axis=0)          # (2T, Dp)
            s12 = jnp.dot(cat, seg, preferred_element_type=jnp.float32)
            s1 = s12[:tile_rows]
            s2 = s12[tile_rows:]
        else:
            # Tiny tiles: avoid sub-sublane-tile slicing; fusion buys nothing.
            s1 = jnp.dot(m, seg, preferred_element_type=jnp.float32)
            s2 = jnp.dot(m * m, seg, preferred_element_type=jnp.float32)
    else:
        # LN segment == full (possibly zero-padded) lane row.
        s1 = jnp.sum(m, axis=-1, keepdims=True)
        s2 = jnp.sum(m * m, axis=-1, keepdims=True)

    inv_d = 1.0 / float(d)
    mu = s1 * inv_d
    var = jnp.maximum(s2 * inv_d - mu * mu, 0.0)
    y = (m - mu) * lax.rsqrt(var + eps)
    g = gamma_ref[...]
    b = beta_ref[...]
    out_ref[...] = (y * g + b).astype(out_ref.dtype)


def _choose_packing(d):
    """Pick a lane-dense layout for the feature axis.

    Returns (k, d_packed, pad_d):
      * k      : number of consecutive (b, s) rows folded into one lane row
      * d_packed: lane width of the packed row (always a multiple of 128)
      * pad_d  : zero padding added to the feature axis (only when k == 1)
    """
    if d % 128 == 0:
        return 1, d, 0
    k = 128 // math.gcd(d, 128)
    if k * d <= 512:                       # generalized packing (D=32,48,64,96,192,...)
        return k, k * d, 0
    d_packed = pl.cdiv(d, 128) * 128       # awkward D: zero-pad features to 128 multiple
    return 1, d_packed, d_packed - d


def _pick_tile_rows(n_fields, d_packed, in_isz, out_isz, r_packed, seg_bytes,
                    desired=4096, vmem_budget_bytes=40 << 20):
    """Largest aligned row tile whose working set fits a conservative VMEM budget.

    Budget models: double-buffered streaming inputs/output (true itemsize),
    ~4 full-tile f32 temporaries inside the body, and the resident seg /
    gamma / beta constants. 40 MiB budget leaves headroom on the VMEM-halved
    v7x (64 MiB physical) while still allowing 2048-4096-row tiles elsewhere.
    """
    stream_per_row = 2 * (n_fields * in_isz + out_isz) * d_packed
    temps_per_row = 4 * 4 * d_packed                     # m, m*m, cat halves, y (f32)
    per_row = stream_per_row + temps_per_row
    fixed = 2 * seg_bytes + 4 * d_packed * 4             # seg + gamma/beta buffers
    budget = max(per_row, vmem_budget_bytes - fixed)
    t = min(desired, budget // per_row)
    # Keep >= 4 grid steps once there's enough work for >=256-row tiles so the
    # "parallel" grid axis can shard across v7x's two TensorCores.
    if r_packed >= 4 * 256:
        t = min(t, pl.cdiv(r_packed, 4))
    if t >= r_packed:
        return r_packed
    align = max(8, 32 // max(1, min(int(in_isz), int(out_isz))))
    return max(align, (t // align) * align)


def merger_layer_forward(info_list, holder_list, gamma, beta, *,
                         eps=1e-5, tile_rows=None):
    """Merge (max) -> ReLU -> (dropout eval) -> LayerNorm in one Pallas kernel.

    info_list:   list of (B, S, D) arrays (one per input field)
    holder_list: list of (B, S) arrays
    gamma, beta: (D,) LayerNorm parameters
    Returns (merged_holder, merged_info) with merged_info of shape (B, S, D).
    """
    n_fields = len(info_list)
    B, S, D = info_list[0].shape
    R = B * S
    dtype = info_list[0].dtype

    k, Dp, pad_d = _choose_packing(D)
    use_seg = k > 1

    if use_seg:
        pad_r = (-R) % k
        Rp = (R + pad_r) // k

        def pack(x):
            x = x.reshape(R, D)
            if pad_r:
                x = jnp.pad(x, ((0, pad_r), (0, 0)))
            return x.reshape(Rp, Dp)       # pure view reshape when pad_r == 0

        fields = [pack(x) for x in info_list]
        gamma_p = jnp.tile(gamma.reshape(1, D), (1, k))          # (1, Dp)
        beta_p = jnp.tile(beta.reshape(1, D), (1, k))            # (1, Dp)
        seg_bytes = Dp * Dp * 4
    else:
        pad_r = 0
        Rp = R

        def pack(x):
            x = x.reshape(R, D)
            if pad_d:
                x = jnp.pad(x, ((0, 0), (0, pad_d)))
            return x

        fields = [pack(x) for x in info_list]
        if pad_d:
            gamma_p = jnp.pad(gamma, (0, pad_d)).reshape(1, Dp)
            beta_p = jnp.pad(beta, (0, pad_d)).reshape(1, Dp)
        else:
            gamma_p = gamma.reshape(1, Dp)
            beta_p = beta.reshape(1, Dp)
        seg_bytes = 0

    in_isz = int(jnp.dtype(dtype).itemsize)
    out_isz = in_isz

    if tile_rows is None:
        tile_rows = _pick_tile_rows(n_fields, Dp, in_isz, out_isz, Rp, seg_bytes)
    tile_rows = int(min(tile_rows, Rp))
    if tile_rows < Rp:
        align = max(8, 32 // max(1, min(in_isz, out_isz)))
        tile_rows = max(align, (tile_rows // align) * align)
        tile_rows = min(tile_rows, Rp)

    grid = (pl.cdiv(Rp, tile_rows),)

    row_spec = pl.BlockSpec((tile_rows, Dp), lambda i: (i, 0))
    vec_spec = pl.BlockSpec((1, Dp), lambda i: (0, 0))

    operands = list(fields)
    in_specs = [row_spec] * n_fields
    if use_seg:
        lane = jnp.arange(Dp, dtype=jnp.int32)
        seg = (lane[:, None] // D == lane[None, :] // D).astype(jnp.float32)
        operands.append(seg)
        in_specs.append(pl.BlockSpec((Dp, Dp), lambda i: (0, 0)))   # resident constant
    operands += [gamma_p, beta_p]
    in_specs += [vec_spec, vec_spec]

    # VMEM request = modeled need + headroom, capped well below v7x's 64 MiB.
    est = (2 * (n_fields * in_isz + out_isz) * Dp * tile_rows
           + 4 * 4 * Dp * tile_rows
           + 2 * seg_bytes + 4 * Dp * 4)
    vmem_limit = int(min(48 << 20, max(est + (8 << 20), 16 << 20)))

    kernel = functools.partial(_merger_kernel, eps=eps, n_fields=n_fields,
                               use_seg=use_seg, d=D, tile_rows=tile_rows)

    out = pl.pallas_call(
        kernel,
        out_shape=jax.ShapeDtypeStruct((Rp, Dp), dtype),
        grid_spec=pltpu.PrefetchScalarGridSpec(
            num_scalar_prefetch=0,
            grid=grid,
            in_specs=in_specs,
            out_specs=row_spec,
        ),
        compiler_params=pltpu.CompilerParams(
            dimension_semantics=("parallel",),   # rows shard across v7x's 2 TCs
            vmem_limit_bytes=vmem_limit,
        ),
    )(*operands)

    if use_seg:
        merged_info = out.reshape(Rp * k, D)[:R].reshape(B, S, D)
    else:
        merged_info = out[:, :D].reshape(B, S, D)

    # Holder merge (elementwise max across fields) — trivial glue, plain JAX.
    merged_holder = functools.reduce(jnp.maximum, holder_list)
    return merged_holder, merged_info


def _reference(info_list, holder_list, gamma, beta, eps=1e-5):
    ref = functools.reduce(jnp.maximum, info_list)
    ref = jnp.maximum(ref, 0.0)
    mu = jnp.mean(ref, axis=-1, keepdims=True)
    var = jnp.mean((ref - mu) ** 2, axis=-1, keepdims=True)
    ref = (ref - mu) * lax.rsqrt(var + eps) * gamma + beta
    holder = functools.reduce(jnp.maximum, holder_list)
    return holder, ref


def _run_case(key, B, S, D, n_fields, tile_rows=None):
    keys = jax.random.split(key, 2 * n_fields + 2)
    info_list = [jax.random.normal(keys[2 * i], (B, S, D), dtype=jnp.float32)
                 for i in range(n_fields)]
    holder_list = [jax.random.normal(keys[2 * i + 1], (B, S), dtype=jnp.float32)
                   for i in range(n_fields)]
    gamma = 1.0 + 0.1 * jax.random.normal(keys[-2], (D,), dtype=jnp.float32)
    beta = 0.1 * jax.random.normal(keys[-1], (D,), dtype=jnp.float32)

    holder, info = merger_layer_forward(info_list, holder_list, gamma, beta,
                                        tile_rows=tile_rows)
    jax.block_until_ready((holder, info))

    ref_holder, ref_info = _reference(info_list, holder_list, gamma, beta)
    assert jnp.allclose(info, ref_info, atol=2e-4, rtol=2e-4), (B, S, D, n_fields)
    assert jnp.allclose(holder, ref_holder), (B, S, D, n_fields)


if __name__ == "__main__":
    key = jax.random.PRNGKey(0)
    ks = jax.random.split(key, 6)

    # Primary small case consistent with the module's forward
    # (D = input_size = output_size for 'mergemax'): k=4 lane packing.
    _run_case(ks[0], B=2, S=8, D=32, n_fields=3)

    # Multi-block / ragged-grid path (user tile override, alignment enforced).
    _run_case(ks[1], B=2, S=48, D=32, n_fields=3, tile_rows=16)

    # D multiple of 128: k=1, plain lane reduction (no seg matmul).
    _run_case(ks[2], B=2, S=8, D=128, n_fields=2)

    # B*S not a multiple of the packing factor: row-padding path (no k=1 fallback).
    _run_case(ks[3], B=1, S=13, D=32, n_fields=2)

    # D not a divisor of 128: generalized packing (k=8, Dp=384).
    _run_case(ks[4], B=2, S=8, D=48, n_fields=2)

    # D > 128, not a multiple: zero-padded feature lanes (Dp=256), exact LN.
    _run_case(ks[5], B=2, S=8, D=160, n_fields=2)

    print("KERNEL_OK")
</pallas_src>

<mosaic_0001>
module attributes {stable_mosaic.version = 11 : i64} {
  func.func @_merger_kernel(%arg0: i32, %arg1: memref<4x128xf32, #tpu.memory_space<vmem>>, %arg2: memref<4x128xf32, #tpu.memory_space<vmem>>, %arg3: memref<4x128xf32, #tpu.memory_space<vmem>>, %arg4: memref<128x128xf32, #tpu.memory_space<vmem>>, %arg5: memref<1x128xf32, #tpu.memory_space<vmem>>, %arg6: memref<1x128xf32, #tpu.memory_space<vmem>>, %arg7: memref<4x128xf32, #tpu.memory_space<vmem>>) attributes {dimension_semantics = [#tpu.dimension_semantics<parallel>], iteration_bounds = array<i64: 1>, scalar_prefetch = 0 : i64, scratch_operands = 0 : i64, tpu.core_type = #tpu.core_type<tc>, window_params = [{transform_indices = @transform_0, window_bounds = array<i64: 4, 128>}, {transform_indices = @transform_1, window_bounds = array<i64: 4, 128>}, {transform_indices = @transform_2, window_bounds = array<i64: 4, 128>}, {pipeline_mode = #tpu.pipeline_mode<synchronous>, transform_indices = @transform_3, window_bounds = array<i64: 128, 128>}, {pipeline_mode = #tpu.pipeline_mode<synchronous>, transform_indices = @transform_4, window_bounds = array<i64: 1, 128>}, {pipeline_mode = #tpu.pipeline_mode<synchronous>, transform_indices = @transform_5, window_bounds = array<i64: 1, 128>}, {transform_indices = @transform_6, window_bounds = array<i64: 4, 128>}]} {
    %c0 = arith.constant 0 : index
    %c0_0 = arith.constant 0 : index
    %0 = vector.load %arg1[%c0, %c0_0] : memref<4x128xf32, #tpu.memory_space<vmem>>, vector<4x128xf32>
    %c0_1 = arith.constant 0 : index
    %c0_2 = arith.constant 0 : index
    %1 = vector.load %arg2[%c0_1, %c0_2] : memref<4x128xf32, #tpu.memory_space<vmem>>, vector<4x128xf32>
    %2 = arith.maximumf %0, %1 : vector<4x128xf32>
    %c0_3 = arith.constant 0 : index
    %c0_4 = arith.constant 0 : index
    %3 = vector.load %arg3[%c0_3, %c0_4] : memref<4x128xf32, #tpu.memory_space<vmem>>, vector<4x128xf32>
    %4 = arith.maximumf %2, %3 : vector<4x128xf32>
    %cst = arith.constant 0.000000e+00 : f32
    %5 = vector.broadcast %cst : f32 to vector<4x128xf32>
    %6 = arith.maximumf %4, %5 : vector<4x128xf32>
    %c0_5 = arith.constant 0 : index
    %c0_6 = arith.constant 0 : index
    %7 = vector.load %arg4[%c0_5, %c0_6] : memref<128x128xf32, #tpu.memory_space<vmem>>, vector<128x128xf32>
    %cst_7 = arith.constant dense<0.000000e+00> : vector<4x128xf32>
    %8 = tpu.matmul %6, %7, %cst_7 {dimension_numbers = #tpu.dot_dimension_numbers<[1], [0], [0], [1], [0, 0, 1, 1], [], []>} : vector<4x128xf32>, vector<128x128xf32>, vector<4x128xf32> -> vector<4x128xf32>
    %9 = arith.mulf %6, %6 : vector<4x128xf32>
    %cst_8 = arith.constant dense<0.000000e+00> : vector<4x128xf32>
    %10 = tpu.matmul %9, %7, %cst_8 {dimension_numbers = #tpu.dot_dimension_numbers<[1], [0], [0], [1], [0, 0, 1, 1], [], []>} : vector<4x128xf32>, vector<128x128xf32>, vector<4x128xf32> -> vector<4x128xf32>
    %cst_9 = arith.constant 3.125000e-02 : f32
    %11 = vector.broadcast %cst_9 : f32 to vector<4x128xf32>
    %12 = arith.mulf %8, %11 : vector<4x128xf32>
    %cst_10 = arith.constant 3.125000e-02 : f32
    %13 = vector.broadcast %cst_10 : f32 to vector<4x128xf32>
    %14 = arith.mulf %10, %13 : vector<4x128xf32>
    %15 = arith.mulf %12, %12 : vector<4x128xf32>
    %16 = arith.subf %14, %15 : vector<4x128xf32>
    %cst_11 = arith.constant 0.000000e+00 : f32
    %17 = vector.broadcast %cst_11 : f32 to vector<4x128xf32>
    %18 = arith.maximumf %16, %17 : vector<4x128xf32>
    %19 = arith.subf %6, %12 : vector<4x128xf32>
    %cst_12 = arith.constant 9.99999974E-6 : f32
    %20 = vector.broadcast %cst_12 : f32 to vector<4x128xf32>
    %21 = arith.addf %18, %20 : vector<4x128xf32>
    %22 = math.rsqrt %21 : vector<4x128xf32>
    %23 = arith.mulf %19, %22 : vector<4x128xf32>
    %c0_13 = arith.constant 0 : index
    %c0_14 = arith.constant 0 : index
    %24 = vector.load %arg5[%c0_13, %c0_14] : memref<1x128xf32, #tpu.memory_space<vmem>>, vector<1x128xf32>
    %c0_15 = arith.constant 0 : index
    %c0_16 = arith.constant 0 : index
    %25 = vector.load %arg6[%c0_15, %c0_16] : memref<1x128xf32, #tpu.memory_space<vmem>>, vector<1x128xf32>
    %26 = vector.broadcast %24 : vector<1x128xf32> to vector<4x128xf32>
    %27 = arith.mulf %23, %26 : vector<4x128xf32>
    %28 = vector.broadcast %25 : vector<1x128xf32> to vector<4x128xf32>
    %29 = arith.addf %27, %28 : vector<4x128xf32>
    %c0_17 = arith.constant 0 : index
    %c0_18 = arith.constant 0 : index
    %30 = vector.load %arg7[%c0_17, %c0_18] : memref<4x128xf32, #tpu.memory_space<vmem>>, vector<4x128xf32>
    tpu.vector_store %arg7[%c0_17, %c0_18], %29 {strides = array<i32>} : memref<4x128xf32, #tpu.memory_space<vmem>>, vector<4x128xf32>,
    return
  }
  func.func @transform_0(%arg0: i32) -> (i32, i32) {
    %c0_i32 = arith.constant 0 : i32
    %c0_i32_0 = arith.constant 0 : i32
    return %arg0, %c0_i32 : i32, i32
  }
  func.func @transform_1(%arg0: i32) -> (i32, i32) {
    %c0_i32 = arith.constant 0 : i32
    %c0_i32_0 = arith.constant 0 : i32
    return %arg0, %c0_i32 : i32, i32
  }
  func.func @transform_2(%arg0: i32) -> (i32, i32) {
    %c0_i32 = arith.constant 0 : i32
    %c0_i32_0 = arith.constant 0 : i32
    return %arg0, %c0_i32 : i32, i32
  }
  func.func @transform_3(%arg0: i32) -> (i32, i32) {
    %c0_i32 = arith.constant 0 : i32
    %c0_i32_0 = arith.constant 0 : i32
    %c0_i32_1 = arith.constant 0 : i32
    return %c0_i32, %c0_i32_0 : i32, i32
  }
  func.func @transform_4(%arg0: i32) -> (i32, i32) {
    %c0_i32 = arith.constant 0 : i32
    %c0_i32_0 = arith.constant 0 : i32
    %c0_i32_1 = arith.constant 0 : i32
    return %c0_i32, %c0_i32_0 : i32, i32
  }
  func.func @transform_5(%arg0: i32) -> (i32, i32) {
    %c0_i32 = arith.constant 0 : i32
    %c0_i32_0 = arith.constant 0 : i32
    %c0_i32_1 = arith.constant 0 : i32
    return %c0_i32, %c0_i32_0 : i32, i32
  }
  func.func @transform_6(%arg0: i32) -> (i32, i32) {
    %c0_i32 = arith.constant 0 : i32
    %c0_i32_0 = arith.constant 0 : i32
    return %arg0, %c0_i32 : i32, i32
  }
}

</mosaic_0001>

<bundles_post_ra>
// kernel: tpu_custom_call.1
= control target key start
LH: loop header
LB: loop body
LE: loop exit
PB: predicated region body
PF: predicated region fallthrough
CT: control target
= control target key end

     0   :  { %11 = vsyncpa [#allocation3], 0  ;;  %s642_s0 = inlined_call_operand.hbm [shape: f32[4,128], index: 0, kind: input, shape index: {}]   ;;  %s643_s1 = inlined_call_operand.hbm [shape: f32[4,128], index: 1, kind: input, shape index: {}]   ;;  %s644_s2 = inlined_call_operand.vmem [shape: f32[4,128], index: 2, kind: input, shape index: {}]   ;;  %s645_s3 = inlined_call_operand.hbm [shape: f32[128,128], index: 3, kind: input, shape index: {}]   ;;  %s646_s4 = inlined_call_operand.vmem [shape: f32[1,128], index: 4, kind: input, shape index: {}]   ;;  %s647_s5 = inlined_call_operand.vmem [shape: f32[1,128], index: 5, kind: input, shape index: {}]   ;;  %s648_s6 = inlined_call_operand.hbm [shape: f32[4,128], index: 6, kind: output, shape index: {}]  }
   0x1   :  { %12 = vsyncpa [#allocation6], 0 }
   0x2   :  { %13 = vsyncpa [#allocation4], 0  ;;  %s525_s21 = smov [#allocation5]   ;;  %s526_s23 = smov [#allocation2]  }
   0x3   :  { %s30_s22 = sshll.u32 %s525_s21, 4  ;;  %s20_s24 = sshll.u32 %s526_s23, 4  ;;  %s31_s22 = int_to_ptr.vmem [resolvable:$true] %s30_s22  ;;  %s21_s24 = int_to_ptr.vmem [resolvable:$true] %s20_s24 }
   0x4   :  { %s431_s27 = scalar_lea.hbm %s643_s1, 64 }
   0x5   :  { %p432_p0 = scmp.ne.s32.totalorder %s643_s1, %s431_s27  ;;  %p435_p1 = scmp.lt.u32.totalorder %s431_s27, %s643_s1 }
   0x7   :  { %p437_p2 = pnand %p435_p1, %p432_p0 }
   0x9   :  { %440 = shalt.err (!%p437_p2)
}
   0xa   :  { %s441_s8 = scalar_lea.vmem %s31_s22, 64  ;;  %p446_p4 = scmp.lt.s32.totalorder %s31_s22, %s31_s22 }
   0xb   :  { %p442_p3 = scmp.ne.s32.totalorder %s31_s22, %s441_s8  ;;  %p447_p5 = scmp.lt.s32.totalorder %s441_s8, %s441_s8 }
   0xd   :  { %p448_p6 = por %p447_p5, %p446_p4 }
   0xf   :  { %p449_p7 = pnand %p448_p6, %p442_p3 }
  0x11   :  { %452 = shalt.err (!%p449_p7)
}
  0x12   :  { %33 = dma.hbm_to_vmem [thread:$0]  %s643_s1, 64, %s31_s22, [#allocation6]  }
  0x13   :  { %s453_s13 = scalar_lea.hbm %s642_s0, 64 }
  0x14   :  { %p454_p8 = scmp.ne.s32.totalorder %s642_s0, %s453_s13  ;;  %p457_p9 = scmp.lt.u32.totalorder %s453_s13, %s642_s0 }
  0x16   :  { %p459_p10 = pnand %p457_p9, %p454_p8 }
  0x18   :  { %462 = shalt.err (!%p459_p10)
}
  0x19   :  { %s463_s18 = scalar_lea.vmem %s21_s24, 64  ;;  %p468_p12 = scmp.lt.s32.totalorder %s21_s24, %s21_s24 }
  0x1a   :  { %p464_p11 = scmp.ne.s32.totalorder %s21_s24, %s463_s18  ;;  %p469_p13 = scmp.lt.s32.totalorder %s463_s18, %s463_s18 }
  0x1c   :  { %p470_p0 = por %p469_p13, %p468_p12 }
  0x1e   :  { %p471_p1 = pnand %p470_p0, %p464_p11 }
  0x20   :  { %474 = shalt.err (!%p471_p1)
}
  0x21   :  { %23 = dma.hbm_to_vmem [thread:$0]  %s642_s0, 64, %s21_s24, [#allocation3]  }
  0x22   :  { %s527_s20 = smov [#allocation7]   ;;  %s475_s25 = scalar_lea.hbm %s645_s3, 2048 }
  0x23   :  { %s41_s21 = sshll.u32 %s527_s20, 4  ;;  %p476_p2 = scmp.ne.s32.totalorder %s645_s3, %s475_s25  ;;  %s42_s21 = int_to_ptr.vmem [resolvable:$true] %s41_s21 }
  0x24   :  { %p479_p3 = scmp.lt.u32.totalorder %s475_s25, %s645_s3 }
  0x26   :  { %p481_p4 = pnand %p479_p3, %p476_p2 }
  0x28   :  { %484 = shalt.err (!%p481_p4)
}
  0x29   :  { %s485_s30 = scalar_lea.vmem %s42_s21, 2048  ;;  %p490_p6 = scmp.lt.s32.totalorder %s42_s21, %s42_s21 }
  0x2a   :  { %p486_p5 = scmp.ne.s32.totalorder %s42_s21, %s485_s30  ;;  %p491_p7 = scmp.lt.s32.totalorder %s485_s30, %s485_s30 }
  0x2c   :  { %p492_p8 = por %p491_p7, %p490_p6 }
  0x2e   :  { %p493_p9 = pnand %p492_p8, %p486_p5 }
  0x30   :  { %496 = shalt.err (!%p493_p9)
}
  0x31   :  { %s528_s0 = smov 128   ;;  %s529_s24 = smov 8  }
  0x32   :  { %47 = dma.hbm_to_vmem [thread:$0]  %s645_s3, 2048, %s42_s21, [#allocation6], %s528_s0, %s528_s0, %s529_s24  }
  0x33   :  { %519 = dma.done.wait [#allocation3], 64  }
  0x34   :  { %520 = vsyncadd [#allocation3], 4294967232 }
  0x35   :  { %521 = dma.done.wait [#allocation6], 2112  }
  0x36   :  { %522 = vsyncadd [#allocation6], 4294965184  ;;  %v530_v0 = vmov 0.0|0.0   ;;  %vm531_vm0 = vmmov 0   ;;  %v532_v1 = vmov 0.0   ;;  %v67_v2 = vld [vmem:[#allocation7] sm:$0xff] }
  0x37   :  { %372 = vmatprep.subr.bf16.mxu0 %v530_v0  ;;  %396 = vmatprep.subr.bf16.mxu1 %v530_v0  ;;  %v68_v3 = vld [vmem:[#allocation7 + $0x8] sm:$0xff]  ;;  %v69_v4 = vld [vmem:[#allocation7 + $0x10] sm:$0xff]  ;;  %v70_v6 = vld [vmem:[#allocation7 + $0x18] sm:$0xff]  ;;  %s533_s13 = smov [#allocation8]  }
  0x38   :  { %334 = vmatprep.mubr.msk.f32.mxu0 %vm531_vm0, %v532_v1  ;;  %369 = vmatprep.mubr.msk.f32.mxu1 %vm531_vm0, %v532_v1  ;;  %v373_v5 = vpack.c.bf16 %v68_v3, %v67_v2  ;;  %v376_v7 = vpack.c.bf16 %v70_v6, %v69_v4  ;;  %v71_v8 = vld [vmem:[#allocation7 + $0x20] sm:$0xff]  ;;  %v72_v9 = vld [vmem:[#allocation7 + $0x28] sm:$0xff]  ;;  %v73_v11 = vld [vmem:[#allocation7 + $0x30] sm:$0xff]  ;;  %s256_s14 = sshll.u32 %s533_s13, 4  ;;  %s257_s14 = int_to_ptr.vmem [resolvable:$true] %s256_s14 }
  0x39   :  { %v379_v10 = vpack.c.bf16 %v72_v9, %v71_v8  ;;  %v74_v12 = vld [vmem:[#allocation7 + $0x38] sm:$0xff]  ;;  %v75_v14 = vld [vmem:[#allocation7 + $0x40] sm:$0xff]  ;;  %v76_v15 = vld [vmem:[#allocation7 + $0x48] sm:$0xff]  ;;  %s497_s15 = scalar_lea.vmem %s257_s14, 64  ;;  %p502_p11 = scmp.lt.s32.totalorder %s257_s14, %s257_s14 }
  0x3a   :  { %374 = vmatpush3.bf16.msra.mxu0 %v373_v5  ;;  %398 = vmatpush3.bf16.msra.mxu1 %v373_v5  ;;  %v382_v13 = vpack.c.bf16 %v74_v12, %v73_v11  ;;  %v385_v16 = vpack.c.bf16 %v76_v15, %v75_v14  ;;  %v61_v17 = vld [vmem:[#allocation2] sm:$0xf]  ;;  %v62_v18 = vld [vmem:[#allocation5] sm:$0xf]  ;;  %v77_v19 = vld [vmem:[#allocation7 + $0x50] sm:$0xff]  ;;  %p498_p10 = scmp.ne.s32.totalorder %s257_s14, %s497_s15  ;;  %p503_p12 = scmp.lt.s32.totalorder %s497_s15, %s497_s15 }
  0x3b   :  { %375 = vmatprep.subr.bf16.mxu0 %v530_v0  ;;  %399 = vmatprep.subr.bf16.mxu1 %v530_v0  ;;  %v78_v20 = vld [vmem:[#allocation7 + $0x58] sm:$0xff]  ;;  %v63_v21 = vmax.f32 %v61_v17, %v62_v18  ;;  %v79_v24 = vld [vmem:[#allocation7 + $0x60] sm:$0xff]  ;;  %v80_v25 = vld [vmem:[#allocation7 + $0x68] sm:$0xff] }
  0x3c   :  { %v388_v22 = vpack.c.bf16 %v78_v20, %v77_v19  ;;  %v64_v23 = vld [vmem:[%s644_s2] sm:$0xf]  ;;  %v391_v27 = vpack.c.bf16 %v80_v25, %v79_v24  ;;  %v81_v28 = vld [vmem:[#allocation7 + $0x70] sm:$0xff]  ;;  %p504_p13 = por %p503_p12, %p502_p11 }
  0x3d   :  { %v65_v26 = vmax.f32 %v63_v21, %v64_v23  ;;  %v82_v29 = vld [vmem:[#allocation7 + $0x78] sm:$0xff] }
  0x3e   :  { %377 = vmatpush3.bf16.msra.mxu0 %v376_v7  ;;  %401 = vmatpush3.bf16.msra.mxu1 %v376_v7  ;;  %v394_v31 = vpack.c.bf16 %v82_v29, %v81_v28  ;;  %v266_v45 = vld [vmem:[%s646_s4] ss:$0 sm:$0xff]  ;;  %p505_p0 = pnand %p504_p13, %p498_p10 }
  0x3f   :  { %378 = vmatprep.subr.bf16.mxu0 %v530_v0  ;;  %402 = vmatprep.subr.bf16.mxu1 %v530_v0  ;;  %v66_v30 = vmax.f32 %v65_v26, 0.0  ;;  %v267_v47 = vld [vmem:[%s647_s5] ss:$0 sm:$0xff] }
  0x41   :  { %v153_v32 = vmul.f32 %v66_v30, %v66_v30 }
  0x42   :  { %380 = vmatpush3.bf16.msra.mxu0 %v379_v10  ;;  %404 = vmatpush3.bf16.msra.mxu1 %v379_v10 }
  0x43   :  { %381 = vmatprep.subr.bf16.mxu0 %v530_v0  ;;  %405 = vmatprep.subr.bf16.mxu1 %v530_v0 }
  0x46   :  { %383 = vmatpush3.bf16.msra.mxu0 %v382_v13  ;;  %407 = vmatpush3.bf16.msra.mxu1 %v382_v13 }
  0x47   :  { %384 = vmatprep.subr.bf16.mxu0 %v530_v0  ;;  %408 = vmatprep.subr.bf16.mxu1 %v530_v0 }
  0x4a   :  { %386 = vmatpush3.bf16.msra.mxu0 %v385_v16  ;;  %410 = vmatpush3.bf16.msra.mxu1 %v385_v16 }
  0x4b   :  { %387 = vmatprep.subr.bf16.mxu0 %v530_v0  ;;  %411 = vmatprep.subr.bf16.mxu1 %v530_v0 }
  0x4e   :  { %389 = vmatpush3.bf16.msra.mxu0 %v388_v22  ;;  %413 = vmatpush3.bf16.msra.mxu1 %v388_v22 }
  0x4f   :  { %390 = vmatprep.subr.bf16.mxu0 %v530_v0  ;;  %414 = vmatprep.subr.bf16.mxu1 %v530_v0 }
  0x52   :  { %392 = vmatpush3.bf16.msra.mxu0 %v391_v27  ;;  %416 = vmatpush3.bf16.msra.mxu1 %v391_v27 }
  0x53   :  { %393 = vmatprep.subr.bf16.mxu0 %v530_v0  ;;  %417 = vmatprep.subr.bf16.mxu1 %v530_v0 }
  0x56   :  { %395 = vmatpush3.bf16.msra.mxu0 %v394_v31  ;;  %419 = vmatpush3.bf16.msra.mxu1 %v394_v31 }
  0x59   :  { %335 = vmatmul.mubr.f32.vlgmr.msra.gmra.mrb[0].mxu0 %v66_v30  ;;  %370 = vmatmul.mubr.f32.vlgmr.msra.gmra.mrb[0].mxu1 %v153_v32 }
 0x12c   :  { %v149_v33 = vpop.f32.mrb[0].mxu0  ;;  %v220_v34 = vpop.f32.mrb[0].mxu1 }
 0x12d   :  { %v224_v35 = vmul.f32 0.03125, %v149_v33  ;;  %v336_v36 = vpop.f32.mrb[1].mxu0  ;;  %v225_v37 = vmul.f32 0.03125, %v220_v34  ;;  %v371_v38 = vpop.f32.mrb[1].mxu1 }
 0x12f   :  { %v226_v39 = vmul.f32 %v224_v35, %v224_v35  ;;  %v229_v43 = vsub.f32 %v66_v30, %v224_v35 }
 0x131   :  { %v227_v40 = vsub.f32 %v225_v37, %v226_v39 }
 0x133   :  { %v228_v41 = vmax.f32 %v227_v40, 0.0 }
 0x135   :  { %v230_v42 = vadd.f32 1e-05, %v228_v41 }
 0x137   :  { %429 = vrsqrt.f32 %v230_v42 }
 0x141   :  { %v430_v44 = vpop.eup %429 }
 0x142   :  { %v232_v46 = vmul.f32 %v430_v44, %v229_v43 }
 0x144   :  { %v241_v48 = vmul.f32 %v266_v45, %v232_v46 }
 0x146   :  { %v248_v49 = vadd.f32 %v267_v47, %v241_v48 }
 0x148   :  { %249 = vst [vmem:[#allocation8] sm:$0xf] %v248_v49 }
 0x149   :  { %508 = shalt.err (!%p505_p0)
}
 0x14a   :  { %s509_s17 = scalar_lea.hbm %s648_s6, 64 }
 0x14b   :  { %p510_p1 = scmp.ne.s32.totalorder %s648_s6, %s509_s17  ;;  %p513_p2 = scmp.lt.u32.totalorder %s509_s17, %s648_s6 }
 0x14d   :  { %p515_p3 = pnand %p513_p2, %p510_p1 }
 0x14f   :  { %518 = shalt.err (!%p515_p3)
}
 0x150   :  { %259 = dma.vmem_to_hbm [thread:$0]  %s257_s14, 64, %s648_s6, [#allocation4]  }
 0x151   :  { %523 = dma.done.wait [#allocation4], 64  }
 0x152   :  { %524 = vsyncadd [#allocation4], 4294967232 }
 0x153   :  { %263 = vsyncpa [#allocation3], 1 }
 0x154   :  { %264 = vsyncpa [#allocation6], 1 }
 0x155   :  { %265 = vsyncpa [#allocation4], 1 }

</bundles_post_ra>
